<compile_context>
chip_gen: v7x
topology: tpu7x:2x2x1
jax: 0.10.0
libtpu: 0.0.40
codegen_flags: <defaults>
</compile_context>

<pallas_src>
import functools
import math

import jax
import jax.numpy as jnp
from jax.experimental import pallas as pl
from jax.experimental.pallas import tpu as pltpu


# ----------------------------- kernel helpers ------------------------------

def _elu_plus_one(x):
    # elu(x, alpha=1) + 1  ==  x + 1 for x > 0, exp(x) for x <= 0
    # (clamp the unselected branch so exp never overflows)
    return jnp.where(x > 0, x + 1.0, jnp.exp(jnp.minimum(x, 0.0)))


def _gelu_exact(x):
    # PyTorch nn.GELU() default (exact, erf-based).
    return 0.5 * x * (1.0 + jax.lax.erf(x * (1.0 / math.sqrt(2.0))))


def _layernorm_cols(x, gamma_col, beta_col, eps=1e-5):
    """LayerNorm over axis 0 (the feature/sublane axis). x: (D, T)."""
    mean = jnp.mean(x, axis=0, keepdims=True)
    xc = x - mean
    var = jnp.mean(xc * xc, axis=0, keepdims=True)
    return xc * jax.lax.rsqrt(var + eps) * gamma_col + beta_col


# --------------------- pass 1: linear-attention statistics ------------------

def _kv_stats_kernel(feat_ref, sub_ref, we1_ref, be1_ref, g1_ref, b1_ref,
                     wk_ref, bk_ref, wv_ref, bv_ref,
                     kv_ref, ksum_ref, *, num_heads, key_size, compute_dtype):
    f32 = jnp.float32
    i = pl.program_id(0)

    @pl.when(i == 0)
    def _init():
        kv_ref[...] = jnp.zeros_like(kv_ref)
        ksum_ref[...] = jnp.zeros_like(ksum_ref)

    feat = feat_ref[...].astype(f32)                    # (N, Tt)
    sub = sub_ref[...].astype(f32)                      # (1, Tt)

    # edge_embedding1: Linear(1, H) in transposed layout (outer product + bias)
    ee1 = we1_ref[...] * sub + be1_ref[...]             # (H, Tt)
    hn = _layernorm_cols(jnp.concatenate([ee1, feat], axis=0),
                         g1_ref[...], b1_ref[...])      # (H+N, Tt)
    hn_c = hn.astype(compute_dtype)

    # All heads fused into a single K and a single V matmul (lane width Tt).
    k = jnp.dot(wk_ref[...].astype(compute_dtype), hn_c,
                preferred_element_type=f32) + bk_ref[...]     # (heads*ks, Tt)
    v = jnp.dot(wv_ref[...].astype(compute_dtype), hn_c,
                preferred_element_type=f32) + bv_ref[...]     # (heads*ks, Tt)
    phik = _elu_plus_one(k)

    ksum_ref[...] += jnp.sum(phik, axis=1, keepdims=True)     # (heads*ks, 1)
    for h in range(num_heads):                                # tiny per-head math
        s = h * key_size
        vh = v[s:s + key_size]                                # (ks, Tt)
        kh = phik[s:s + key_size]                             # (ks, Tt)
        # kv[h][k, d] = sum_t vh[k, t] * kh[d, t]   (MXU, contraction over Tt)
        kv_ref[h] += jax.lax.dot_general(
            vh.astype(compute_dtype), kh.astype(compute_dtype),
            (((1,), (1,)), ((), ())), preferred_element_type=f32)


# --------------------- pass 2: per-tile block output ------------------------

def _block_out_kernel(feat_ref, sub_ref, kv_ref, ksum_ref,
                      we1_ref, be1_ref, g1_ref, b1_ref,
                      wq_ref, bq_ref, wo_ref, bo_ref,
                      wl1_ref, bl1_ref,
                      we2_ref, be2_ref, g2_ref, b2_ref,
                      wd2_ref, bd2_ref, wd3_ref, bd3_ref,
                      out_ref, *, num_heads, key_size, compute_dtype):
    f32 = jnp.float32
    feat = feat_ref[...].astype(f32)                    # (N, Tt)
    sub = sub_ref[...].astype(f32)                      # (1, Tt)

    # --- norm1(cat(edge_embedding1, feat)) (feature axis = sublanes) ---
    ee1 = we1_ref[...] * sub + be1_ref[...]             # (H, Tt)
    hn1 = _layernorm_cols(jnp.concatenate([ee1, feat], axis=0),
                          g1_ref[...], b1_ref[...])     # (H+N, Tt)
    hn1_c = hn1.astype(compute_dtype)

    # --- linear attention: all heads fused for Q; per-head only for kv math ---
    q = jnp.dot(wq_ref[...].astype(compute_dtype), hn1_c,
                preferred_element_type=f32) + bq_ref[...]     # (heads*ks, Tt)
    phiq = _elu_plus_one(q)
    ksum = ksum_ref[...]                                      # (heads*ks, 1)

    attn_parts = []
    for h in range(num_heads):
        s = h * key_size
        qh = phiq[s:s + key_size]                             # (ks, Tt)
        denom = jnp.sum(qh * ksum[s:s + key_size], axis=0,
                        keepdims=True) + 1e-6                 # (1, Tt)
        attn_h = jnp.dot(kv_ref[h], qh, preferred_element_type=f32)  # (ks, Tt)
        attn_parts.append(attn_h * pl.reciprocal(denom))
    attn = jnp.concatenate(attn_parts, axis=0)                # (heads*ks, Tt)

    # --- attention out-projection + lin1 + residual (single fused matmuls) ---
    h_atten = jnp.dot(wo_ref[...].astype(compute_dtype),
                      attn.astype(compute_dtype),
                      preferred_element_type=f32) + bo_ref[...]   # (H, Tt)
    h_lin1 = jnp.dot(wl1_ref[...].astype(compute_dtype),
                     h_atten.astype(compute_dtype),
                     preferred_element_type=f32) + bl1_ref[...]   # (N, Tt)
    hiddens = feat + h_lin1                                       # (N, Tt)

    # --- edge_embedding2 + norm2 + DenseBlock ---
    ee2 = we2_ref[...] * sub + be2_ref[...]                       # (H, Tt)
    hn2 = _layernorm_cols(jnp.concatenate([ee2, hiddens], axis=0),
                          g2_ref[...], b2_ref[...])               # (H+N, Tt)
    hn2_c = hn2.astype(compute_dtype)
    hid = jnp.dot(wd2_ref[...].astype(compute_dtype), hn2_c,
                  preferred_element_type=f32) + bd2_ref[...]      # (4N, Tt)
    hid = _gelu_exact(hid)
    h_dense = jnp.dot(wd3_ref[...].astype(compute_dtype),
                      hid.astype(compute_dtype),
                      preferred_element_type=f32) + bd3_ref[...]  # (N, Tt)

    out_ref[...] = (hiddens + h_dense).astype(out_ref.dtype)


# ------------------------------- wrapper ------------------------------------

def _pick_seq_tile(seq):
    # Largest lane-aligned tile (<=512) that evenly divides seq; otherwise a
    # single full-extent tile (legal: block dim equals full array dim).
    if seq % 128 == 0:
        for t in (512, 384, 256, 128):
            if seq % t == 0:
                return t
    return seq


def transformer_block_forward(params, feat_embedding, sub_adj_vec, *,
                              n_node, hidden_size, num_heads, key_size,
                              compute_dtype=jnp.float32, seq_tile=None):
    f32 = jnp.float32
    H, N, ks, heads = hidden_size, n_node, key_size, num_heads
    HK = heads * ks
    D = H + N
    seq = sub_adj_vec.shape[0]

    feat = feat_embedding.astype(f32)                      # (N, seq) -- as-is
    sub_t = sub_adj_vec.astype(f32).reshape(1, seq)        # (1, seq)

    def w(name):
        return params[name + ".weight"].astype(f32)        # torch layout (out, in)

    def bcol(name):
        return params[name + ".bias"].astype(f32).reshape(-1, 1)

    we1, be1 = w("edge_embedding1"), bcol("edge_embedding1")   # (H,1),(H,1)
    we2, be2 = w("edge_embedding2"), bcol("edge_embedding2")
    g1 = params["norm1.weight"].astype(f32).reshape(-1, 1)     # (H+N,1)
    b1 = params["norm1.bias"].astype(f32).reshape(-1, 1)
    g2 = params["norm2.weight"].astype(f32).reshape(-1, 1)
    b2 = params["norm2.bias"].astype(f32).reshape(-1, 1)
    wq, bq = w("atten.q"), bcol("atten.q")                     # (HK,D),(HK,1)
    wk, bk = w("atten.k"), bcol("atten.k")
    wv, bv = w("atten.v"), bcol("atten.v")
    wo, bo = w("atten.out"), bcol("atten.out")                 # (H,HK),(H,1)
    wl1, bl1 = w("lin1"), bcol("lin1")                         # (N,H),(N,1)
    wd2, bd2 = w("dense.lin2"), bcol("dense.lin2")             # (4N,D),(4N,1)
    wd3, bd3 = w("dense.lin3"), bcol("dense.lin3")             # (N,4N),(N,1)

    Tt = seq_tile if seq_tile is not None else _pick_seq_tile(seq)
    assert seq % Tt == 0, (seq, Tt)
    n_tiles = seq // Tt

    def full(a):
        # Whole-array block (weights / small stats), constant across the grid.
        return pl.BlockSpec(a.shape, lambda i, _nd=a.ndim: (0,) * _nd)

    feat_spec = pl.BlockSpec((N, Tt), lambda i: (0, i))
    sub_spec = pl.BlockSpec((1, Tt), lambda i: (0, i))
    out_spec = pl.BlockSpec((N, Tt), lambda i: (0, i))

    vmem_limit = 48 * 1024 * 1024   # explicit (v7x scoped default is 32 MiB)

    # ---- pass 1: accumulate linear-attention kv / k_sum over seq tiles ----
    stats_in = (feat, sub_t, we1, be1, g1, b1, wk, bk, wv, bv)
    flops_a = int(seq * (4 * D * HK + 2 * heads * ks * ks))
    bytes_a = int(4 * (sum(int(a.size) for a in stats_in)
                       + heads * ks * ks + HK))
    kv, ksum = pl.pallas_call(
        functools.partial(_kv_stats_kernel, num_heads=heads, key_size=ks,
                          compute_dtype=compute_dtype),
        out_shape=(jax.ShapeDtypeStruct((heads, ks, ks), f32),
                   jax.ShapeDtypeStruct((HK, 1), f32)),
        grid=(n_tiles,),
        in_specs=[feat_spec, sub_spec] + [full(a) for a in stats_in[2:]],
        out_specs=(pl.BlockSpec((heads, ks, ks), lambda i: (0, 0, 0)),
                   pl.BlockSpec((HK, 1), lambda i: (0, 0))),
        compiler_params=pltpu.CompilerParams(
            dimension_semantics=("arbitrary",),
            vmem_limit_bytes=vmem_limit),
        cost_estimate=pl.CostEstimate(flops=flops_a,
                                      transcendentals=int(seq * HK),
                                      bytes_accessed=bytes_a),
    )(*stats_in)

    # ---- pass 2: per-tile block output (parallel over seq tiles) ----
    out_in = (feat, sub_t, kv, ksum, we1, be1, g1, b1, wq, bq, wo, bo,
              wl1, bl1, we2, be2, g2, b2, wd2, bd2, wd3, bd3)
    flops_b = int(seq * (2 * D * HK + 2 * heads * ks * ks + 2 * HK * H
                         + 2 * H * N + 8 * D * N + 8 * N * N))
    bytes_b = int(4 * (sum(int(a.size) for a in out_in) + N * seq))
    out_t = pl.pallas_call(
        functools.partial(_block_out_kernel, num_heads=heads, key_size=ks,
                          compute_dtype=compute_dtype),
        out_shape=jax.ShapeDtypeStruct((N, seq), f32),
        grid=(n_tiles,),
        in_specs=[feat_spec, sub_spec] + [full(a) for a in out_in[2:]],
        out_specs=out_spec,
        compiler_params=pltpu.CompilerParams(
            dimension_semantics=("parallel",),
            vmem_limit_bytes=vmem_limit),
        cost_estimate=pl.CostEstimate(flops=flops_b,
                                      transcendentals=int(seq * (HK + 4 * N)),
                                      bytes_accessed=bytes_b),
    )(*out_in)

    # Module semantics return (seq, n_node); the kernel keeps seq on the lane
    # axis for lane-dense stores, so transpose once outside (layout plumbing).
    return out_t.T


# ------------------------- params & pure-JAX reference ----------------------

def init_params(key, n_node, hidden_size, num_heads, key_size, widening_factor):
    H, N, hk = hidden_size, n_node, num_heads * key_size
    D = H + N
    shapes = {
        "edge_embedding1.weight": (H, 1), "edge_embedding1.bias": (H,),
        "norm1.weight": (D,), "norm1.bias": (D,),
        "atten.q.weight": (hk, D), "atten.q.bias": (hk,),
        "atten.k.weight": (hk, D), "atten.k.bias": (hk,),
        "atten.v.weight": (hk, D), "atten.v.bias": (hk,),
        "atten.out.weight": (H, hk), "atten.out.bias": (H,),
        "lin1.weight": (N, H), "lin1.bias": (N,),
        "edge_embedding2.weight": (H, 1), "edge_embedding2.bias": (H,),
        "norm2.weight": (D,), "norm2.bias": (D,),
        "dense.lin2.weight": (widening_factor * N, D),
        "dense.lin2.bias": (widening_factor * N,),
        "dense.lin3.weight": (N, widening_factor * N),
        "dense.lin3.bias": (N,),
    }
    params = {}
    names = sorted(shapes)
    keys = jax.random.split(key, len(names))
    for k_, name in zip(keys, names):
        shp = shapes[name]
        if name.startswith("norm") and name.endswith("weight"):
            params[name] = (jnp.ones(shp, jnp.float32)
                            + 0.05 * jax.random.normal(k_, shp, jnp.float32))
        else:
            params[name] = 0.1 * jax.random.normal(k_, shp, jnp.float32)
    return params


def transformer_block_reference(params, feat_embedding, sub_adj_vec, *,
                                n_node, hidden_size, num_heads, key_size):
    H, N, ks = hidden_size, n_node, key_size

    def linear(name, x):
        return x @ params[name + ".weight"].T + params[name + ".bias"]

    def layernorm(name, x):
        mean = x.mean(-1, keepdims=True)
        var = ((x - mean) ** 2).mean(-1, keepdims=True)
        return ((x - mean) / jnp.sqrt(var + 1e-5)) * params[name + ".weight"] \
            + params[name + ".bias"]

    feat_t = feat_embedding.T
    ee1 = linear("edge_embedding1", sub_adj_vec)
    h_norm = layernorm("norm1", jnp.concatenate([ee1, feat_t], axis=1))
    T = h_norm.shape[0]
    fm = lambda x: jax.nn.elu(x) + 1.0
    qh = fm(linear("atten.q", h_norm).reshape(T, num_heads, ks))
    kh = fm(linear("atten.k", h_norm).reshape(T, num_heads, ks))
    vh = linear("atten.v", h_norm).reshape(T, num_heads, ks)
    kv = jnp.einsum("thd,thk->hkd", kh, vh)
    normalizer = 1.0 / (jnp.einsum("thd,hd->th", qh, kh.sum(0)) + 1e-6)
    attn = jnp.einsum("thd,hkd,th->thk", qh, kv, normalizer)
    h_atten = linear("atten.out", attn.reshape(T, num_heads * ks))
    h_atten = linear("lin1", h_atten)
    hiddens = feat_t + h_atten
    ee2 = linear("edge_embedding2", sub_adj_vec)
    h_norm2 = layernorm("norm2", jnp.concatenate([ee2, hiddens], axis=-1))
    hid = jax.nn.gelu(linear("dense.lin2", h_norm2), approximate=False)
    h_dense = linear("dense.lin3", hid)
    return hiddens + h_dense


# --------------------------------- main --------------------------------------

if __name__ == "__main__":
    n_node, seq, hidden, heads, ksz, widen = 8, 256, 32, 2, 8, 4

    key = jax.random.PRNGKey(0)
    kp, kf, ka = jax.random.split(key, 3)
    params = init_params(kp, n_node, hidden, heads, ksz, widen)
    feat_embedding = jax.random.normal(kf, (n_node, seq), jnp.float32)  # (n_node, seq)
    sub_adj_vec = jax.random.normal(ka, (seq, 1), jnp.float32)          # (seq, 1)

    # seq_tile=128 -> 2 seq tiles: exercises the kv/k_sum accumulation pass and
    # the "parallel" per-tile output pass (lane-dense 128-wide tiles).
    out = transformer_block_forward(params, feat_embedding, sub_adj_vec,
                                    n_node=n_node, hidden_size=hidden,
                                    num_heads=heads, key_size=ksz,
                                    seq_tile=128)
    out = jax.block_until_ready(out)

    ref = transformer_block_reference(params, feat_embedding, sub_adj_vec,
                                      n_node=n_node, hidden_size=hidden,
                                      num_heads=heads, key_size=ksz)

    assert out.shape == (seq, n_node), out.shape
    assert jnp.allclose(out, ref, atol=1e-3, rtol=1e-3), \
        f"max abs err {jnp.max(jnp.abs(out - ref))}"
    print("KERNEL_OK")
</pallas_src>

<mosaic_0001>
module attributes {stable_mosaic.version = 11 : i64} {
  func.func @_kv_stats_kernel(%arg0: i32, %arg1: memref<8x128xf32, #tpu.memory_space<vmem>>, %arg2: memref<1x128xf32, #tpu.memory_space<vmem>>, %arg3: memref<32x1xf32, #tpu.memory_space<vmem>>, %arg4: memref<32x1xf32, #tpu.memory_space<vmem>>, %arg5: memref<40x1xf32, #tpu.memory_space<vmem>>, %arg6: memref<40x1xf32, #tpu.memory_space<vmem>>, %arg7: memref<16x40xf32, #tpu.memory_space<vmem>>, %arg8: memref<16x1xf32, #tpu.memory_space<vmem>>, %arg9: memref<16x40xf32, #tpu.memory_space<vmem>>, %arg10: memref<16x1xf32, #tpu.memory_space<vmem>>, %arg11: memref<2x8x8xf32, #tpu.memory_space<vmem>>, %arg12: memref<16x1xf32, #tpu.memory_space<vmem>>) attributes {dimension_semantics = [#tpu.dimension_semantics<arbitrary>], iteration_bounds = array<i64: 2>, scalar_prefetch = 0 : i64, scratch_operands = 0 : i64, tpu.core_type = #tpu.core_type<tc>, window_params = [{transform_indices = @transform_0, window_bounds = array<i64: 8, 128>}, {transform_indices = @transform_1, window_bounds = array<i64: 1, 128>}, {pipeline_mode = #tpu.pipeline_mode<synchronous>, transform_indices = @transform_2, window_bounds = array<i64: 32, 1>}, {pipeline_mode = #tpu.pipeline_mode<synchronous>, transform_indices = @transform_3, window_bounds = array<i64: 32, 1>}, {pipeline_mode = #tpu.pipeline_mode<synchronous>, transform_indices = @transform_4, window_bounds = array<i64: 40, 1>}, {pipeline_mode = #tpu.pipeline_mode<synchronous>, transform_indices = @transform_5, window_bounds = array<i64: 40, 1>}, {pipeline_mode = #tpu.pipeline_mode<synchronous>, transform_indices = @transform_6, window_bounds = array<i64: 16, 40>}, {pipeline_mode = #tpu.pipeline_mode<synchronous>, transform_indices = @transform_7, window_bounds = array<i64: 16, 1>}, {pipeline_mode = #tpu.pipeline_mode<synchronous>, transform_indices = @transform_8, window_bounds = array<i64: 16, 40>}, {pipeline_mode = #tpu.pipeline_mode<synchronous>, transform_indices = @transform_9, window_bounds = array<i64: 16, 1>}, {pipeline_mode = #tpu.pipeline_mode<synchronous>, transform_indices = @transform_10, window_bounds = array<i64: 2, 8, 8>}, {pipeline_mode = #tpu.pipeline_mode<synchronous>, transform_indices = @transform_11, window_bounds = array<i64: 16, 1>}]} {
    %c0_i32 = arith.constant 0 : i32
    %0 = arith.cmpi eq, %arg0, %c0_i32 : i32
    %1 = arith.extui %0 : i1 to i32
    %c0_i32_0 = arith.constant 0 : i32
    %2 = arith.cmpi ne, %1, %c0_i32_0 : i32
    scf.if %2 {
      %cst_47 = arith.constant 0.000000e+00 : f32
      %76 = vector.broadcast %cst_47 : f32 to vector<2x8x8xf32>
      %c0_48 = arith.constant 0 : index
      %c0_49 = arith.constant 0 : index
      %c0_50 = arith.constant 0 : index
      %77 = vector.load %arg11[%c0_48, %c0_49, %c0_50] : memref<2x8x8xf32, #tpu.memory_space<vmem>>, vector<2x8x8xf32>
      tpu.vector_store %arg11[%c0_48, %c0_49, %c0_50], %76 {strides = array<i32>} : memref<2x8x8xf32, #tpu.memory_space<vmem>>, vector<2x8x8xf32>,
      %cst_51 = arith.constant 0.000000e+00 : f32
      %78 = vector.broadcast %cst_51 : f32 to vector<16x1xf32>
      %c0_52 = arith.constant 0 : index
      %c0_53 = arith.constant 0 : index
      %79 = vector.load %arg12[%c0_52, %c0_53] : memref<16x1xf32, #tpu.memory_space<vmem>>, vector<16x1xf32>
      tpu.vector_store %arg12[%c0_52, %c0_53], %78 {strides = array<i32>} : memref<16x1xf32, #tpu.memory_space<vmem>>, vector<16x1xf32>,
    } else {
    }
    %c0 = arith.constant 0 : index
    %c0_1 = arith.constant 0 : index
    %3 = vector.load %arg1[%c0, %c0_1] : memref<8x128xf32, #tpu.memory_space<vmem>>, vector<8x128xf32>
    %c0_2 = arith.constant 0 : index
    %c0_3 = arith.constant 0 : index
    %4 = vector.load %arg2[%c0_2, %c0_3] : memref<1x128xf32, #tpu.memory_space<vmem>>, vector<1x128xf32>
    %c0_4 = arith.constant 0 : index
    %c0_5 = arith.constant 0 : index
    %5 = vector.load %arg3[%c0_4, %c0_5] : memref<32x1xf32, #tpu.memory_space<vmem>>, vector<32x1xf32>
    %6 = vector.broadcast %5 : vector<32x1xf32> to vector<32x128xf32>
    %7 = vector.broadcast %4 : vector<1x128xf32> to vector<32x128xf32>
    %8 = arith.mulf %6, %7 : vector<32x128xf32>
    %c0_6 = arith.constant 0 : index
    %c0_7 = arith.constant 0 : index
    %9 = vector.load %arg4[%c0_6, %c0_7] : memref<32x1xf32, #tpu.memory_space<vmem>>, vector<32x1xf32>
    %10 = vector.broadcast %9 : vector<32x1xf32> to vector<32x128xf32>
    %11 = arith.addf %8, %10 : vector<32x128xf32>
    %12 = tpu.concatenate %11, %3 in 0 : vector<32x128xf32>, vector<8x128xf32> -> vector<40x128xf32>
    %c0_8 = arith.constant 0 : index
    %c0_9 = arith.constant 0 : index
    %13 = vector.load %arg5[%c0_8, %c0_9] : memref<40x1xf32, #tpu.memory_space<vmem>>, vector<40x1xf32>
    %c0_10 = arith.constant 0 : index
    %c0_11 = arith.constant 0 : index
    %14 = vector.load %arg6[%c0_10, %c0_11] : memref<40x1xf32, #tpu.memory_space<vmem>>, vector<40x1xf32>
    %cst = arith.constant dense<0.000000e+00> : vector<128xf32>
    %15 = vector.multi_reduction <add>, %12, %cst [0] : vector<40x128xf32> to vector<128xf32>
    %16 = vector.shape_cast %15 : vector<128xf32> to vector<1x128xf32>
    %cst_12 = arith.constant 4.000000e+01 : f32
    %17 = vector.broadcast %cst_12 : f32 to vector<1x128xf32>
    %18 = arith.divf %16, %17 : vector<1x128xf32>
    %19 = vector.broadcast %18 : vector<1x128xf32> to vector<40x128xf32>
    %20 = arith.subf %12, %19 : vector<40x128xf32>
    %21 = arith.mulf %20, %20 : vector<40x128xf32>
    %cst_13 = arith.constant dense<0.000000e+00> : vector<128xf32>
    %22 = vector.multi_reduction <add>, %21, %cst_13 [0] : vector<40x128xf32> to vector<128xf32>
    %23 = vector.shape_cast %22 : vector<128xf32> to vector<1x128xf32>
    %cst_14 = arith.constant 4.000000e+01 : f32
    %24 = vector.broadcast %cst_14 : f32 to vector<1x128xf32>
    %25 = arith.divf %23, %24 : vector<1x128xf32>
    %cst_15 = arith.constant 9.99999974E-6 : f32
    %26 = vector.broadcast %cst_15 : f32 to vector<1x128xf32>
    %27 = arith.addf %25, %26 : vector<1x128xf32>
    %28 = math.rsqrt %27 : vector<1x128xf32>
    %29 = vector.broadcast %28 : vector<1x128xf32> to vector<40x128xf32>
    %30 = arith.mulf %20, %29 : vector<40x128xf32>
    %31 = vector.broadcast %13 : vector<40x1xf32> to vector<40x128xf32>
    %32 = arith.mulf %30, %31 : vector<40x128xf32>
    %33 = vector.broadcast %14 : vector<40x1xf32> to vector<40x128xf32>
    %34 = arith.addf %32, %33 : vector<40x128xf32>
    %c0_16 = arith.constant 0 : index
    %c0_17 = arith.constant 0 : index
    %35 = vector.load %arg7[%c0_16, %c0_17] : memref<16x40xf32, #tpu.memory_space<vmem>>, vector<16x40xf32>
    %cst_18 = arith.constant dense<0.000000e+00> : vector<16x128xf32>
    %36 = tpu.matmul %35, %34, %cst_18 {dimension_numbers = #tpu.dot_dimension_numbers<[1], [0], [0], [1], [0, 0, 1, 1], [], []>} : vector<16x40xf32>, vector<40x128xf32>, vector<16x128xf32> -> vector<16x128xf32>
    %c0_19 = arith.constant 0 : index
    %c0_20 = arith.constant 0 : index
    %37 = vector.load %arg8[%c0_19, %c0_20] : memref<16x1xf32, #tpu.memory_space<vmem>>, vector<16x1xf32>
    %38 = vector.broadcast %37 : vector<16x1xf32> to vector<16x128xf32>
    %39 = arith.addf %36, %38 : vector<16x128xf32>
    %c0_21 = arith.constant 0 : index
    %c0_22 = arith.constant 0 : index
    %40 = vector.load %arg9[%c0_21, %c0_22] : memref<16x40xf32, #tpu.memory_space<vmem>>, vector<16x40xf32>
    %cst_23 = arith.constant dense<0.000000e+00> : vector<16x128xf32>
    %41 = tpu.matmul %40, %34, %cst_23 {dimension_numbers = #tpu.dot_dimension_numbers<[1], [0], [0], [1], [0, 0, 1, 1], [], []>} : vector<16x40xf32>, vector<40x128xf32>, vector<16x128xf32> -> vector<16x128xf32>
    %c0_24 = arith.constant 0 : index
    %c0_25 = arith.constant 0 : index
    %42 = vector.load %arg10[%c0_24, %c0_25] : memref<16x1xf32, #tpu.memory_space<vmem>>, vector<16x1xf32>
    %43 = vector.broadcast %42 : vector<16x1xf32> to vector<16x128xf32>
    %44 = arith.addf %41, %43 : vector<16x128xf32>
    %cst_26 = arith.constant 0.000000e+00 : f32
    %45 = vector.broadcast %cst_26 : f32 to vector<16x128xf32>
    %46 = arith.cmpf ogt, %39, %45 : vector<16x128xf32>
    %cst_27 = arith.constant 1.000000e+00 : f32
    %47 = vector.broadcast %cst_27 : f32 to vector<16x128xf32>
    %48 = arith.addf %39, %47 : vector<16x128xf32>
    %cst_28 = arith.constant 0.000000e+00 : f32
    %49 = vector.broadcast %cst_28 : f32 to vector<16x128xf32>
    %50 = arith.minimumf %39, %49 : vector<16x128xf32>
    %51 = math.exp %50 : vector<16x128xf32>
    %52 = arith.select %46, %48, %51 : vector<16x128xi1>, vector<16x128xf32>
    %c0_29 = arith.constant 0 : index
    %c0_30 = arith.constant 0 : index
    %53 = vector.load %arg12[%c0_29, %c0_30] : memref<16x1xf32, #tpu.memory_space<vmem>>, vector<16x1xf32>
    %cst_31 = arith.constant dense<0.000000e+00> : vector<16xf32>
    %54 = vector.multi_reduction <add>, %52, %cst_31 [1] : vector<16x128xf32> to vector<16xf32>
    %55 = vector.shape_cast %54 : vector<16xf32> to vector<16x1xf32>
    %56 = arith.addf %53, %55 : vector<16x1xf32>
    %c0_32 = arith.constant 0 : index
    %c0_33 = arith.constant 0 : index
    %57 = vector.load %arg12[%c0_32, %c0_33] : memref<16x1xf32, #tpu.memory_space<vmem>>, vector<16x1xf32>
    tpu.vector_store %arg12[%c0_32, %c0_33], %56 {strides = array<i32>} : memref<16x1xf32, #tpu.memory_space<vmem>>, vector<16x1xf32>,
    %58 = vector.extract_strided_slice %44 {offsets = [0, 0], sizes = [8, 128], strides = [1, 1]} : vector<16x128xf32> to vector<8x128xf32>
    %59 = vector.extract_strided_slice %52 {offsets = [0, 0], sizes = [8, 128], strides = [1, 1]} : vector<16x128xf32> to vector<8x128xf32>
    %c0_34 = arith.constant 0 : index
    %c0_35 = arith.constant 0 : index
    %c0_36 = arith.constant 0 : index
    %60 = vector.load %arg11[%c0_34, %c0_35, %c0_36] : memref<2x8x8xf32, #tpu.memory_space<vmem>>, vector<1x8x8xf32>
    %61 = vector.shape_cast %60 : vector<1x8x8xf32> to vector<8x8xf32>
    %cst_37 = arith.constant dense<0.000000e+00> : vector<8x8xf32>
    %62 = tpu.matmul %58, %59, %cst_37 {dimension_numbers = #tpu.dot_dimension_numbers<[1], [1], [0], [0], [0, 0, 1, 0], [], []>} : vector<8x128xf32>, vector<8x128xf32>, vector<8x8xf32> -> vector<8x8xf32>
    %63 = arith.addf %61, %62 : vector<8x8xf32>
    %c0_38 = arith.constant 0 : index
    %c0_39 = arith.constant 0 : index
    %c0_40 = arith.constant 0 : index
    %64 = vector.load %arg11[%c0_38, %c0_39, %c0_40] : memref<2x8x8xf32, #tpu.memory_space<vmem>>, vector<1x8x8xf32>
    %65 = vector.shape_cast %64 : vector<1x8x8xf32> to vector<8x8xf32>
    %66 = vector.shape_cast %63 : vector<8x8xf32> to vector<1x8x8xf32>
    tpu.vector_store %arg11[%c0_38, %c0_39, %c0_40], %66 {strides = array<i32>} : memref<2x8x8xf32, #tpu.memory_space<vmem>>, vector<1x8x8xf32>,
    %67 = vector.extract_strided_slice %44 {offsets = [8, 0], sizes = [8, 128], strides = [1, 1]} : vector<16x128xf32> to vector<8x128xf32>
    %68 = vector.extract_strided_slice %52 {offsets = [8, 0], sizes = [8, 128], strides = [1, 1]} : vector<16x128xf32> to vector<8x128xf32>
    %c1 = arith.constant 1 : index
    %c0_41 = arith.constant 0 : index
    %c0_42 = arith.constant 0 : index
    %69 = vector.load %arg11[%c1, %c0_41, %c0_42] : memref<2x8x8xf32, #tpu.memory_space<vmem>>, vector<1x8x8xf32>
    %70 = vector.shape_cast %69 : vector<1x8x8xf32> to vector<8x8xf32>
    %cst_43 = arith.constant dense<0.000000e+00> : vector<8x8xf32>
    %71 = tpu.matmul %67, %68, %cst_43 {dimension_numbers = #tpu.dot_dimension_numbers<[1], [1], [0], [0], [0, 0, 1, 0], [], []>} : vector<8x128xf32>, vector<8x128xf32>, vector<8x8xf32> -> vector<8x8xf32>
    %72 = arith.addf %70, %71 : vector<8x8xf32>
    %c1_44 = arith.constant 1 : index
    %c0_45 = arith.constant 0 : index
    %c0_46 = arith.constant 0 : index
    %73 = vector.load %arg11[%c1_44, %c0_45, %c0_46] : memref<2x8x8xf32, #tpu.memory_space<vmem>>, vector<1x8x8xf32>
    %74 = vector.shape_cast %73 : vector<1x8x8xf32> to vector<8x8xf32>
    %75 = vector.shape_cast %72 : vector<8x8xf32> to vector<1x8x8xf32>
    tpu.vector_store %arg11[%c1_44, %c0_45, %c0_46], %75 {strides = array<i32>} : memref<2x8x8xf32, #tpu.memory_space<vmem>>, vector<1x8x8xf32>,
    return
  }
  func.func @transform_0(%arg0: i32) -> (i32, i32) {
    %c0_i32 = arith.constant 0 : i32
    %c0_i32_0 = arith.constant 0 : i32
    return %c0_i32, %arg0 : i32, i32
  }
  func.func @transform_1(%arg0: i32) -> (i32, i32) {
    %c0_i32 = arith.constant 0 : i32
    %c0_i32_0 = arith.constant 0 : i32
    return %c0_i32, %arg0 : i32, i32
  }
  func.func @transform_2(%arg0: i32) -> (i32, i32) {
    %c0_i32 = arith.constant 0 : i32
    %c0_i32_0 = arith.constant 0 : i32
    %c0_i32_1 = arith.constant 0 : i32
    return %c0_i32, %c0_i32_0 : i32, i32
  }
  func.func @transform_3(%arg0: i32) -> (i32, i32) {
    %c0_i32 = arith.constant 0 : i32
    %c0_i32_0 = arith.constant 0 : i32
    %c0_i32_1 = arith.constant 0 : i32
    return %c0_i32, %c0_i32_0 : i32, i32
  }
  func.func @transform_4(%arg0: i32) -> (i32, i32) {
    %c0_i32 = arith.constant 0 : i32
    %c0_i32_0 = arith.constant 0 : i32
    %c0_i32_1 = arith.constant 0 : i32
    return %c0_i32, %c0_i32_0 : i32, i32
  }
  func.func @transform_5(%arg0: i32) -> (i32, i32) {
    %c0_i32 = arith.constant 0 : i32
    %c0_i32_0 = arith.constant 0 : i32
    %c0_i32_1 = arith.constant 0 : i32
    return %c0_i32, %c0_i32_0 : i32, i32
  }
  func.func @transform_6(%arg0: i32) -> (i32, i32) {
    %c0_i32 = arith.constant 0 : i32
    %c0_i32_0 = arith.constant 0 : i32
    %c0_i32_1 = arith.constant 0 : i32
    return %c0_i32, %c0_i32_0 : i32, i32
  }
  func.func @transform_7(%arg0: i32) -> (i32, i32) {
    %c0_i32 = arith.constant 0 : i32
    %c0_i32_0 = arith.constant 0 : i32
    %c0_i32_1 = arith.constant 0 : i32
    return %c0_i32, %c0_i32_0 : i32, i32
  }
  func.func @transform_8(%arg0: i32) -> (i32, i32) {
    %c0_i32 = arith.constant 0 : i32
    %c0_i32_0 = arith.constant 0 : i32
    %c0_i32_1 = arith.constant 0 : i32
    return %c0_i32, %c0_i32_0 : i32, i32
  }
  func.func @transform_9(%arg0: i32) -> (i32, i32) {
    %c0_i32 = arith.constant 0 : i32
    %c0_i32_0 = arith.constant 0 : i32
    %c0_i32_1 = arith.constant 0 : i32
    return %c0_i32, %c0_i32_0 : i32, i32
  }
  func.func @transform_10(%arg0: i32) -> (i32, i32, i32) {
    %c0_i32 = arith.constant 0 : i32
    %c0_i32_0 = arith.constant 0 : i32
    %c0_i32_1 = arith.constant 0 : i32
    %c0_i32_2 = arith.constant 0 : i32
    return %c0_i32, %c0_i32_0, %c0_i32_1 : i32, i32, i32
  }
  func.func @transform_11(%arg0: i32) -> (i32, i32) {
    %c0_i32 = arith.constant 0 : i32
    %c0_i32_0 = arith.constant 0 : i32
    %c0_i32_1 = arith.constant 0 : i32
    return %c0_i32, %c0_i32_0 : i32, i32
  }
}

</mosaic_0001>

<bundles_post_ra>
// kernel: tpu_custom_call.1
= control target key start
LH: loop header
LB: loop body
LE: loop exit
PB: predicated region body
PF: predicated region fallthrough
CT: control target
= control target key end

     0   :  { %17 = vsyncpa [#allocation3], 0  ;;  %s1210_s17 = smov 0   ;;  %s1367_s0 = inlined_call_operand.vmem [shape: f32[8,256], index: 0, kind: input, shape index: {}]   ;;  %s1368_s1 = inlined_call_operand.vmem [shape: f32[1,256], index: 1, kind: input, shape index: {}]   ;;  %s1369_s2 = inlined_call_operand.vmem [shape: f32[32,1], index: 2, kind: input, shape index: {}]   ;;  %s1370_s3 = inlined_call_operand.vmem [shape: f32[32,1], index: 3, kind: input, shape index: {}]   ;;  %s1371_s4 = inlined_call_operand.vmem [shape: f32[40,1], index: 4, kind: input, shape index: {}]   ;;  %s1372_s5 = inlined_call_operand.vmem [shape: f32[40,1], index: 5, kind: input, shape index: {}]   ;;  %s1373_s6 = inlined_call_operand.vmem [shape: f32[16,40], index: 6, kind: input, shape index: {}]   ;;  %s1374_s7 = inlined_call_operand.vmem [shape: f32[16,1], index: 7, kind: input, shape index: {}]   ;;  %s1375_s8 = inlined_call_operand.vmem [shape: f32[16,40], index: 8, kind: input, shape index: {}]   ;;  %s1376_s9 = inlined_call_operand.vmem [shape: f32[16,1], index: 9, kind: input, shape index: {}]   ;;  %s1377_s10 = inlined_call_operand.hbm [shape: f32[2,8,8], index: 10, kind: output, shape index: {0}]   ;;  %s1378_s11 = inlined_call_operand.vmem [shape: f32[16,1], index: 11, kind: output, shape index: {1}]  }
   0x1 LB: > { %s1216_s18 = sadd.s32 4294967295, %s1141_s17   ;;  %p994_p0 = scmp.ge.s32.totalorder %s1141_s17, 1  ;;  %s1141_s17 = sphi %s1210_s17, %s23_s17  }
   0x2   : > { %p338_p1 = scmp.lt.s32.totalorder %s1141_s17, 3 }
   0x4   : > { %p339_p2 = pnand %p994_p0, %p338_p1 }
   0x5   : > { %p375_p3 = scmp.lt.s32.totalorder (!%p339_p2), %s1216_s18, 1  ;;  %p996_p4 = scmp.ne.s32.totalorder (!%p339_p2), %s1216_s18, 0 }
   0x6   : > { %342 = sbr.rel (%p339_p2) target bundleno = 706 (0x2c2), region = 60 }
   0xd   : > { %s1222_s19 = scalar_select %p375_p3, %s1216_s18, 1 }
   0xe   : > { %385 = sbr.rel (%p996_p4) target bundleno = 21 (0x15), region = 64  ;;  %vm386_vm0 = vcmask (!%p996_p4), 64512   ;;  %vm389_vm1 = vcmask (!%p996_p4), 7168   ;;  %v1143_v0 = vmov (!%p996_p4), 0.0  }
   0xf   : > { %s995_s20 = sshll.u32 %s1222_s19, 3  ;;  %s381_s23 = scalar_lea.vmem %s1368_s1, %s1222_s19  ;;  %387 = vst.msk [vmem:[#allocation2] sm:$0xff] (!%p996_p4), %vm386_vm0, %v1143_v0  ;;  %388 = vst.msk [vmem:[#allocation2 + $0x8] sm:$0xff] (!%p996_p4), %vm386_vm0, %v1143_v0 }
  0x10   : > { %s1232_s26 = scalar_lea.vmem %s1367_s0, %s995_s20  ;;  %390 = vst.msk [vmem:[%s1378_s11] sm:$0xff] (!%p996_p4), %vm389_vm1, %v1143_v0  ;;  %391 = vst.msk [vmem:[%s1378_s11 + $0x8] sm:$0xff] (!%p996_p4), %vm389_vm1, %v1143_v0 }
  0x15 PF: > { %v396_v1 = vld [vmem:[%s1369_s2 + $0x10] sm:$0xff]  ;;  %v394_v2 = vld [vmem:[%s1369_s2] sm:$0xff]  ;;  %v1144_v3 = vmov 0   ;;  %v395_v5 = vld [vmem:[%s1369_s2 + $0x8] sm:$0xff]  ;;  %vm580_vm2 = vcmask 326656   ;;  %vm1146_vm3 = vmmov 0  }
  0x16   : > { %1098 = vset.pattern.permute.xlu1 %v1144_v3  ;;  %1097 = vset.pattern.permute.xlu0 %v1144_v3  ;;  %v428_v4 = vld [vmem:[%s1370_s3] sm:$0xff]  ;;  %v397_v6 = vld [vmem:[%s1369_s2 + $0x18] sm:$0xff]  ;;  %v429_v7 = vld [vmem:[%s1370_s3 + $0x8] sm:$0xff]  ;;  %vm777_vm6 = vcmask 7168   ;;  %s1147_s15 = smov [#allocation2]   ;;  %vm852_vm7 = vcmask 64512  }
  0x17   : > { %410 = vperm.xlu1 %1098, %v396_v1   ;;  %400 = vperm.xlu0 %1097, %v394_v2   ;;  %v431_v8 = vld [vmem:[%s1370_s3 + $0x18] sm:$0xff]  ;;  %v430_v9 = vld [vmem:[%s1370_s3 + $0x10] sm:$0xff]  ;;  %v457_v10 = vld [vmem:[%s1371_s4 + $0x8] sm:$0xff]  ;;  %s934_s16 = sshll.u32 %s1147_s15, 4  ;;  %p1080_p5 = scmp.eq.s32.totalorder %s1216_s18, 1  ;;  %s935_s16 = int_to_ptr.vmem [resolvable:$true] %s934_s16 }
  0x18   : > { %v456_v11 = vld [vmem:[%s1371_s4] sm:$0xff]  ;;  %v462_v12 = vld [vmem:[%s1372_s5 + $0x8] sm:$0xff]  ;;  %v459_v14 = vld [vmem:[%s1371_s4 + $0x18] sm:$0xff]  ;;  %s1105_s20 = scalar_lea.vmem %s935_s16, 256  ;;  %p1112_p9 = scmp.lt.s32.totalorder %s935_s16, %s935_s16 }
  0x19   : > { %v461_v13 = vld [vmem:[%s1372_s5] sm:$0xff]  ;;  %v458_v15 = vld [vmem:[%s1371_s4 + $0x10] sm:$0xff]  ;;  %v464_v16 = vld [vmem:[%s1372_s5 + $0x18] sm:$0xff]  ;;  %p1106_p6 = scmp.ne.s32.totalorder %s935_s16, %s1105_s20  ;;  %p1113_p10 = scmp.lt.s32.totalorder %s1105_s20, %s1105_s20 }
  0x1a   : > { %v463_v17 = vld [vmem:[%s1372_s5 + $0x10] sm:$0xff]  ;;  %v465_v18 = vld [vmem:[%s1372_s5 + $0x20] sm:$0xff]  ;;  %v569_v20 = vld [vmem:[%s1374_s7 + $0x8] sm:$0xff] }
  0x1b   : > { %434 = vperm.xlu1 %1098, %v428_v4   ;;  %405 = vperm.xlu0 %1097, %v395_v5   ;;  %v460_v19 = vld [vmem:[%s1371_s4 + $0x20] sm:$0xff]  ;;  %v665_v22 = vld [vmem:[%s1376_s9 + $0x8] sm:$0xff]  ;;  %p1107_p7 = pnand %p1106_p6, %p1080_p5  ;;  %p1114_p11 = por %p1113_p10, %p1112_p9 }
  0x1c   : > { %v568_v21 = vld [vmem:[%s1374_s7] sm:$0xff] }
  0x1d   : > { %v664_v23 = vld [vmem:[%s1376_s9] sm:$0xff]  ;;  %p1108_p8 = pneg %p1107_p7 }
  0x1e   : > { %v566_v24 = vld [vmem:[%s1373_s6] sm:$0xff] }
  0x1f   : > { %415 = vperm.xlu1 %1098, %v397_v6   ;;  %439 = vperm.xlu0 %1097, %v429_v7   ;;  %v662_v25 = vld [vmem:[%s1375_s8] sm:$0xff]  ;;  %p1115_p12 = pnand %p1114_p11, %p1108_p8 }
  0x20   : > { %1034 = vmatprep.mubr.msk.f32.mxu0 %vm580_vm2, %v566_v24  ;;  %1047 = vmatprep.mubr.msk.f32.mxu1 %vm580_vm2, %v662_v25  ;;  %v997_v30 = vld [vmem:[%s381_s23] ss:$0 sm:$0xff] }
  0x21   : > { %v392_v45 = vld [vmem:[%s1232_s26] sm:$0xff] }
  0x23   : > { %449 = vperm.xlu1 %1098, %v431_v8   ;;  %444 = vperm.xlu0 %1097, %v430_v9  }
  0x27   : > { %513 = vperm.xlu1 %1098, %v457_v10   ;;  %508 = vperm.xlu0 %1097, %v456_v11  }
  0x2b   : > { %543 = vperm.xlu1 %1098, %v462_v12   ;;  %538 = vperm.xlu0 %1097, %v461_v13  }
  0x2f   : > { %523 = vperm.xlu1 %1098, %v459_v14   ;;  %518 = vperm.xlu0 %1097, %v458_v15  }
  0x33   : > { %553 = vperm.xlu1 %1098, %v464_v16   ;;  %548 = vperm.xlu0 %1097, %v463_v17  }
  0x37   : > { %558 = vperm.xlu1 %1098, %v465_v18   ;;  %528 = vperm.xlu0 %1097, %v460_v19  }
  0x3b   : > { %577 = vperm.xlu1 %1098, %v569_v20   ;;  %572 = vperm.xlu0 %1097, %v568_v21  }
  0x3f   : > { %673 = vperm.xlu1 %1098, %v665_v22   ;;  %668 = vperm.xlu0 %1097, %v664_v23  }
  0x96   : > { %v411_v26 = vpop.permute.xlu1 %410  ;;  %v401_v27 = vpop.permute.xlu0 %400 }
  0x97   : > { %v424_v34 = vmul.f32 %v997_v30, %v401_v27  ;;  %v426_v36 = vmul.f32 %v997_v30, %v411_v26 }
  0x9a   : > { %v435_v28 = vpop.permute.xlu1 %434  ;;  %v406_v29 = vpop.permute.xlu0 %405 }
  0x9b   : > { %v425_v31 = vmul.f32 %v997_v30, %v406_v29  ;;  %v452_v37 = vadd.f32 %v435_v28, %v424_v34 }
  0x9e   : > { %v416_v32 = vpop.permute.xlu1 %415  ;;  %v440_v33 = vpop.permute.xlu0 %439 }
  0x9f   : > { %v453_v35 = vadd.f32 %v440_v33, %v425_v31  ;;  %v427_v40 = vmul.f32 %v997_v30, %v416_v32 }
  0xa1   : > { %v466_v41 = vadd.f32 %v453_v35, %v452_v37 }
  0xa2   : > { %v450_v38 = vpop.permute.xlu1 %449  ;;  %v445_v39 = vpop.permute.xlu0 %444 }
  0xa3   : > { %v454_v42 = vadd.f32 %v445_v39, %v426_v36  ;;  %v455_v43 = vadd.f32 %v450_v38, %v427_v40 }
  0xa5   : > { %v467_v44 = vadd.f32 %v466_v41, %v454_v42  ;;  %v567_v41 = vld [vmem:[%s1373_s6 + $0x8] sm:$0xff] }
  0xa6   : > { %v509_v11 = vpop.permute.xlu0 %508  ;;  %v514_v12 = vpop.permute.xlu1 %513 }
  0xa7   : > { %v468_v46 = vadd.f32 %v467_v44, %v455_v43 }
  0xa9   : > { %v469_v47 = vadd.f32 %v468_v46, %v392_v45 }
  0xaa   : > { %v539_v15 = vpop.permute.xlu0 %538  ;;  %v544_v16 = vpop.permute.xlu1 %543 }
  0xab   : > { %v470_v48 = vrot.slane %v469_v47, 4 }
  0xad   : > { %v471_v49 = vadd.f32 %v470_v48, %v469_v47 }
  0xae   : > { %v519_v17 = vpop.permute.xlu0 %518  ;;  %v524_v18 = vpop.permute.xlu1 %523 }
  0xaf   : > { %v472_v50 = vrot.slane %v471_v49, 2 }
  0xb1   : > { %v473_v51 = vadd.f32 %v472_v50, %v471_v49 }
  0xb2   : > { %v549_v24 = vpop.permute.xlu0 %548  ;;  %v554_v29 = vpop.permute.xlu1 %553 }
  0xb3   : > { %v474_v52 = vrot.slane %v473_v51, 1 }
  0xb5   : > { %v475_v53 = vadd.f32 %v474_v52, %v473_v51 }
  0xb6   : > { %v529_v36 = vpop.permute.xlu0 %528  ;;  %v559_v39 = vpop.permute.xlu1 %558 }
  0xb7   : > { %v477_v54 = vmul.f32 0.025, %v475_v53 }
  0xb9   : > { %v478_v55 = vsub.f32 %v452_v37, %v477_v54  ;;  %v480_v56 = vsub.f32 %v454_v42, %v477_v54  ;;  %v479_v57 = vsub.f32 %v453_v35, %v477_v54  ;;  %v481_v59 = vsub.f32 %v455_v43, %v477_v54  ;;  %v663_v42 = vld [vmem:[%s1375_s8 + $0x8] sm:$0xff] }
  0xba   : > { %v482_v61 = vsub.f32 %v392_v45, %v477_v54  ;;  %v1145_v43 = vmov 0.0   ;;  %v578_v44 = vpop.permute.xlu1 %577  ;;  %v573_v45 = vpop.permute.xlu0 %572 }
  0xbb   : > { %v483_v58 = vmul.f32 %v478_v55, %v478_v55  ;;  %v484_v60 = vmul.f32 %v479_v57, %v479_v57  ;;  %v485_v62 = vmul.f32 %v480_v56, %v480_v56  ;;  %v486_v0 = vmul.f32 %v481_v59, %v481_v59 }
  0xbc   : > { %v487_v2 = vmul.f32 %v482_v61, %v482_v61 }
  0xbd   : > { %v488_v63 = vadd.f32 %v484_v60, %v483_v58 }
  0xbf   : > { %v489_v1 = vadd.f32 %v488_v63, %v485_v62  ;;  %v669_v63 = vpop.permute.xlu0 %668 }
  0xc1   : > { %v490_v3 = vadd.f32 %v489_v1, %v486_v0 }
  0xc3   : > { %v491_v4 = vadd.f32 %v490_v3, %v487_v2  ;;  %v770_v2 = vld [vmem:[%s1378_s11 + $0x8] sm:$0xff]  ;;  %v769_v3 = vld [vmem:[%s1378_s11] sm:$0xff] }
  0xc5   : > { %v492_v5 = vrot.slane %v491_v4, 4 }
  0xc7   : > { %v493_v6 = vadd.f32 %v492_v5, %v491_v4 }
  0xc9   : > { %v494_v7 = vrot.slane %v493_v6, 2 }
  0xcb   : > { %v495_v8 = vadd.f32 %v494_v7, %v493_v6 }
  0xcd   : > { %v496_v9 = vrot.slane %v495_v8, 1 }
  0xcf   : > { %v497_v10 = vadd.f32 %v496_v9, %v495_v8  ;;  %v855_v8 = vld [vmem:[#allocation2 + $0x8] sm:$0xff]  ;;  %v780_v9 = vld [vmem:[#allocation2] sm:$0xff] }
  0xd1   : > { %v498_v13 = vmul.f32 0.025, %v497_v10 }
  0xd3   : > { %v499_v14 = vadd.f32 1e-05, %v498_v13 }
  0xd5   : > { %1099 = vrsqrt.f32 %v499_v14 }
  0xdf   : > { %v1100_v19 = vpop.eup %1099 }
  0xe0   : > { %v502_v20 = vmul.f32 %v1100_v19, %v479_v57  ;;  %v501_v21 = vmul.f32 %v1100_v19, %v478_v55  ;;  %v504_v22 = vmul.f32 %v1100_v19, %v481_v59  ;;  %v503_v23 = vmul.f32 %v1100_v19, %v480_v56 }
  0xe1   : > { %v505_v30 = vmul.f32 %v1100_v19, %v482_v61  ;;  %v674_v61 = vpop.permute.xlu1 %673 }
  0xe2   : > { %v532_v25 = vmul.f32 %v514_v12, %v502_v20  ;;  %v531_v26 = vmul.f32 %v509_v11, %v501_v21  ;;  %v534_v27 = vmul.f32 %v524_v18, %v504_v22  ;;  %v533_v28 = vmul.f32 %v519_v17, %v503_v23 }
  0xe3   : > { %v535_v38 = vmul.f32 %v529_v36, %v505_v30 }
  0xe4   : > { %v562_v31 = vadd.f32 %v544_v16, %v532_v25  ;;  %v561_v32 = vadd.f32 %v539_v15, %v531_v26  ;;  %v564_v33 = vadd.f32 %v554_v29, %v534_v27  ;;  %v563_v34 = vadd.f32 %v549_v24, %v533_v28 }
  0xe5   : > { %v565_v40 = vadd.f32 %v559_v39, %v535_v38 }
  0xe6   : > { %v1060_v35 = vpack.c.bf16 %v562_v31, %v561_v32  ;;  %v1064_v37 = vpack.c.bf16 %v564_v33, %v563_v34 }
  0xe8   : > { %1061 = vmatprep.subr.bf16.mxu0 %v1060_v35  ;;  %1069 = vmatprep.subr.bf16.mxu1 %v1060_v35 }
  0xe9   : > { %1063 = vmatpush3.bf16.msra.mxu0 %v1060_v35  ;;  %1071 = vmatpush3.bf16.msra.mxu1 %v1060_v35 }
  0xea   : > { %1065 = vmatprep.subr.bf16.mxu0 %v1064_v37  ;;  %1073 = vmatprep.subr.bf16.mxu1 %v1064_v37 }
  0xed   : > { %1067 = vmatpush3.bf16.msra.mxu0 %v1064_v37  ;;  %1075 = vmatpush3.bf16.msra.mxu1 %v1064_v37 }
  0xee   : > { %1032 = vmatprep.subr.mxu0 %v565_v40  ;;  %1045 = vmatprep.subr.mxu1 %v565_v40 }
  0xf1   : > { %1033 = vmatpush3.msra.mxu0 %v565_v40  ;;  %1046 = vmatpush3.msra.mxu1 %v565_v40 }
  0xf2   : > { %1035 = vmatmul.mubr.msk.f32.vlgmr.msra.gmra.mrb[0].mxu0 %vm580_vm2, %v567_v41  ;;  %1048 = vmatmul.mubr.msk.f32.vlgmr.msra.gmra.mrb[0].mxu1 %vm580_vm2, %v663_v42 }
  0xf3   : > { %1055 = vmatprep.subr.mxu1 %v1145_v43  ;;  %1050 = vmatprep.subr.mxu0 %v1145_v43 }
  0xf4   : > { %1057 = vmatprep.mubr.msk.f32.mxu1 %vm1146_vm3, %v1145_v43  ;;  %1052 = vmatprep.mubr.msk.f32.mxu0 %vm1146_vm3, %v1145_v43 }
 0x1c5   : > { %v1036_v46 = vpop.f32.mrb[0].mxu0  ;;  %v1049_v47 = vpop.f32.mrb[0].mxu1 }
 0x1c6   : > { %v659_v48 = vadd.f32 %v1036_v46, %v578_v44  ;;  %v653_v49 = vpop.f32.mrb[1].mxu0  ;;  %v748_v50 = vpop.f32.mrb[1].mxu1  ;;  %v754_v0 = vadd.f32 %v1049_v47, %v674_v61 }
 0x1c7   : > { %v654_v51 = vadd.f32 %v653_v49, %v573_v45  ;;  %v749_v1 = vadd.f32 %v748_v50, %v669_v63 }
 0x1c8   : > { %v762_v52 = vmin.f32 %v659_v48, 0.0  ;;  %v760_v56 = vadd.f32 1.0, %v659_v48  ;;  %vm758_vm4 = vcmp.gt.f32.partialorder %v659_v48, 0.0 }
 0x1c9   : > { %v761_v53 = vmin.f32 %v654_v51, 0.0  ;;  %v759_v58 = vadd.f32 1.0, %v654_v51  ;;  %vm757_vm5 = vcmp.gt.f32.partialorder %v654_v51, 0.0 }
 0x1ca   : > { %v765_v54 = vmul.f32 1.442695, %v762_v52 }
 0x1cb   : > { %v763_v55 = vmul.f32 1.442695, %v761_v53 }
 0x1cc   : > { %1101 = vpow2.f32 %v765_v54 }
 0x1cd   : > { %1103 = vpow2.f32 %v763_v55 }
 0x1d6   : > { %v1102_v57 = vpop.eup %1101 }
 0x1d7   : > { %v1104_v59 = vpop.eup %1103  ;;  %v768_v60 = vsel %vm758_vm4, %v760_v56, %v1102_v57 }
 0x1d8   : > { %773 = vadd.xlane.f32.xlu1 %v768_v60  ;;  %1056 = vmatpush3.xpose.msra.mxu1 %v768_v60  ;;  %v767_v62 = vsel %vm757_vm5, %v759_v58, %v1104_v59 }
 0x1d9   : > { %771 = vadd.xlane.f32.xlu0 %v767_v62  ;;  %1051 = vmatpush3.xpose.msra.mxu0 %v767_v62 }
 0x1db   : > { %1058 = vmatmul.mubr.f32.vlgmr.msra.gmra.mrb[2].mxu1 %v754_v0 }
 0x1dc   : > { %1053 = vmatmul.mubr.f32.vlgmr.msra.gmra.mrb[2].mxu0 %v749_v1 }
 0x265   : > { %v774_v4 = vpop.xlane.xlu1 %773 }
 0x266   : > { %v776_v5 = vadd.f32 %v774_v4, %v770_v2  ;;  %v772_v6 = vpop.xlane.xlu0 %771 }
 0x267   : > { %v775_v7 = vadd.f32 %v772_v6, %v769_v3 }
 0x268   : > { %779 = vst.msk [vmem:[%s1378_s11 + $0x8] sm:$0xff] %vm777_vm6, %v776_v5 }
 0x269   : > { %778 = vst.msk [vmem:[%s1378_s11] sm:$0xff] %vm777_vm6, %v775_v7 }
 0x2ae   : > { %v922_v10 = vpop.f32.mrb[2].mxu1 }
 0x2af   : > { %v926_v11 = vadd.f32 %v922_v10, %v855_v8  ;;  %v847_v12 = vpop.f32.mrb[2].mxu0  ;;  %v1059_v13 = vpop.f32.mrb[3].mxu1 }
 0x2b0   : > { %v851_v14 = vadd.f32 %v847_v12, %v780_v9  ;;  %v1054_v15 = vpop.f32.mrb[3].mxu0 }
 0x2b1   : > { %927 = vst.msk [vmem:[#allocation2 + $0x8] sm:$0xff] %vm852_vm7, %v926_v11 }
 0x2b2   : > { %853 = vst.msk [vmem:[#allocation2] sm:$0xff] %vm852_vm7, %v851_v14 }
 0x2b3   : > { %1118 = shalt.err (!%p1115_p12)
}
 0x2b4   : > { %s1119_s19 = scalar_lea.hbm %s1377_s10, 256 }
 0x2b5   : > { %p1120_p13 = scmp.ne.s32.totalorder %s1377_s10, %s1119_s19  ;;  %p1125_p2 = scmp.lt.u32.totalorder %s1119_s19, %s1377_s10 }
 0x2b7   : > { %p1121_p0 = pnand %p1120_p13, %p1080_p5 }
 0x2b9   : > { %p1122_p1 = pneg %p1121_p0 }
 0x2bb   : > { %p1127_p3 = pnand %p1125_p2, %p1122_p1 }
 0x2bd   : > { %1130 = shalt.err (!%p1127_p3)
}
 0x2be   : > { %s1148_s27 = smov 128   ;;  %s1149_s28 = smov 8  }
 0x2bf   : > { %1077 = dma.vmem_to_hbm [thread:$0]  (%p1080_p5), %s935_s16, 256, %s1377_s10, [#allocation3], %s1148_s27, %s1148_s27, %s1149_s28  }
 0x2c0   : > { %1136 = dma.done.wait (%p1080_p5), [#allocation3], 256  }
 0x2c1   : > { %1138 = vsyncadd (%p1080_p5), [#allocation3], 4294967040 }
 0x2c2 PF: > { %s23_s17 = sadd.s32 1, %s1141_s17  }
 0x2c3   : > { %p20_p4 = scmp.ge.s32.totalorder %s23_s17, 4  }
 0x2c5   :  { %22 = sbr.rel (!%p20_p4) target bundleno = 1 (0x1), region = 103 }
 0x2cc   :  { %956 = vsyncpa [#allocation3], 1 }
 0x2cd   :  { %958 = vsyncpa [#allocation3 + $0x1], 1 }

</bundles_post_ra>
